<compile_context>
chip_gen: v7x
topology: tpu7x:2x2x1
jax: 0.10.0
libtpu: 0.0.40
codegen_flags: <defaults>
</compile_context>

<pallas_src>
import functools

import jax
import jax.numpy as jnp
from jax.experimental import pallas as pl
from jax.experimental.pallas import tpu as pltpu

KERNEL_SIZE = 3   # module default kernel_size
PADDING = 1       # module default padding_size (=> 'same' conv, pool over all L)


def _round_up(x, m):
    return ((x + m - 1) // m) * m


def encoder_kernel(x_ref, w_ref, b_ref, out_ref):
    """One grid step over TB batch elements.

    x_ref  : (TB, L, D)   unpadded input slab (conv boundaries handled here)
    w_ref  : (K*D, Hp)    conv weight, row k*D + d  <-  weight[h, d, k]
    b_ref  : (1, Hp)      conv bias, f32
    out_ref: (TB, Hp)     tanh(max_t conv(x)[t] + b)
    """
    x = x_ref[...]
    tb, L, D = x.shape
    hp = out_ref.shape[-1]

    # Build the k = t-1 / t / t+1 taps with zero boundary rows (conv padding=1).
    zrow = jnp.zeros((tb, 1, D), dtype=x.dtype)
    x_prev = jnp.concatenate([zrow, x[:, : L - 1, :]], axis=1)   # x[t-1]
    x_next = jnp.concatenate([x[:, 1:, :], zrow], axis=1)        # x[t+1]
    xcat = jnp.concatenate([x_prev, x, x_next], axis=-1)         # (TB, L, 3*D)

    # Single MXU contraction of depth K*D, f32 accumulation.  The cast keeps
    # the MXU in the compute dtype (bf16 path) while the epilogue stays f32.
    y = jnp.dot(xcat.reshape(tb * L, KERNEL_SIZE * D).astype(w_ref.dtype),
                w_ref[...],
                preferred_element_type=jnp.float32)              # (TB*L, Hp)

    # MaxPool1d over the whole sequence; bias is constant over time, so adding
    # it after the max is equivalent.  tanh only on the (TB, Hp) pooled result.
    pooled = jnp.max(y.reshape(tb, L, hp), axis=1)               # (TB, Hp)
    out_ref[...] = jnp.tanh(pooled + b_ref[...]).astype(out_ref.dtype)


@functools.partial(jax.jit, static_argnames=("block_b", "compute_dtype"))
def encoder_forward(inputs, weight, bias, *, block_b=None, compute_dtype=None):
    """inputs: (B, L, D); weight: (H, D, K) PyTorch Conv1d layout; bias: (H,).
    Returns (B, H), same semantics as Encoder.forward (conv -> pool -> tanh -> squeeze)."""
    B, L, D = inputs.shape
    H, Dw, K = weight.shape
    assert Dw == D and K == KERNEL_SIZE
    out_dtype = inputs.dtype
    if compute_dtype is None:
        compute_dtype = inputs.dtype

    # Lane-dense hidden dim: pad H up to a multiple of 128 (unmasked stores).
    Hp = _round_up(max(H, 128), 128)

    # Fold batches so the matmul M dimension is ~256 rows per grid step.  Keep
    # the output block legal: block_b == B (single step) or a multiple of 8.
    if block_b is None:
        target = max(1, 256 // max(L, 1))
        block_b = B if B <= target else _round_up(target, 8)
    if block_b != B and block_b % 8 != 0:
        block_b = _round_up(block_b, 8)
    Bp = _round_up(B, block_b)

    x = inputs
    if Bp != B:
        x = jnp.pad(x, ((0, Bp - B), (0, 0), (0, 0)))

    # (H, D, K) -> (K*D, Hp): row k*D + d, col h  <-  weight[h, d, k]
    # (row order matches the in-kernel concat order [x[t-1] | x[t] | x[t+1]]).
    w = jnp.transpose(weight, (2, 1, 0)).reshape(K * D, H)
    w = jnp.pad(w, ((0, 0), (0, Hp - H))).astype(compute_dtype)
    b2 = jnp.pad(bias.reshape(1, H), ((0, 0), (0, Hp - H))).astype(jnp.float32)

    cost = pl.CostEstimate(
        flops=2 * Bp * L * K * D * Hp,
        transcendentals=Bp * Hp,
        bytes_accessed=int(Bp * L * D * jnp.dtype(x.dtype).itemsize
                           + (K * D + 1) * Hp * jnp.dtype(compute_dtype).itemsize
                           + Bp * Hp * jnp.dtype(out_dtype).itemsize),
    )

    out = pl.pallas_call(
        encoder_kernel,
        out_shape=jax.ShapeDtypeStruct((Bp, Hp), out_dtype),
        grid_spec=pltpu.PrefetchScalarGridSpec(
            num_scalar_prefetch=0,
            grid=(Bp // block_b,),
            in_specs=[
                pl.BlockSpec((block_b, L, D), lambda i: (i, 0, 0)),
                pl.BlockSpec((K * D, Hp), lambda i: (0, 0)),
                pl.BlockSpec((1, Hp), lambda i: (0, 0)),
            ],
            out_specs=pl.BlockSpec((block_b, Hp), lambda i: (i, 0)),
        ),
        compiler_params=pltpu.CompilerParams(
            dimension_semantics=("parallel",)),
        cost_estimate=cost,
    )(x, w, b2)

    # Slice off batch / hidden padding.
    return out[:B, :H]


if __name__ == "__main__":
    # Small shapes consistent with the module: max_length=16, embedding_dim=32,
    # hidden_size=64, kernel_size=3, padding=1.
    B, L, D, H = 2, 16, 32, 64

    key = jax.random.PRNGKey(0)
    k1, k2, k3 = jax.random.split(key, 3)
    inputs = jax.random.normal(k1, (B, L, D), dtype=jnp.float32)
    weight = 0.1 * jax.random.normal(k2, (H, D, KERNEL_SIZE), dtype=jnp.float32)
    bias = 0.1 * jax.random.normal(k3, (H,), dtype=jnp.float32)

    out = jax.block_until_ready(encoder_forward(inputs, weight, bias))

    # Pure-JAX reference (same semantics as the PyTorch module).
    xp = jnp.pad(inputs, ((0, 0), (PADDING, PADDING), (0, 0)))
    conv = bias[None, None, :] + sum(
        jnp.einsum('bld,hd->blh', xp[:, k:k + L, :], weight[:, :, k])
        for k in range(KERNEL_SIZE))
    ref = jnp.tanh(jnp.max(conv, axis=1))

    assert out.shape == (B, H)
    assert jnp.allclose(out, ref, atol=1e-4, rtol=1e-4)

    # bf16 MXU path (f32 accumulation / f32 epilogue) — looser tolerance.
    out_bf16 = jax.block_until_ready(
        encoder_forward(inputs, weight, bias, compute_dtype=jnp.bfloat16))
    assert out_bf16.shape == (B, H)
    assert jnp.allclose(out_bf16, ref, atol=6e-2, rtol=6e-2)

    print("KERNEL_OK")
</pallas_src>

<mosaic_0001>
module attributes {stable_mosaic.version = 11 : i64} {
  func.func @encoder_kernel(%arg0: i32, %arg1: memref<2x16x32xf32, #tpu.memory_space<vmem>>, %arg2: memref<96x128xf32, #tpu.memory_space<vmem>>, %arg3: memref<1x128xf32, #tpu.memory_space<vmem>>, %arg4: memref<2x128xf32, #tpu.memory_space<vmem>>) attributes {dimension_semantics = [#tpu.dimension_semantics<parallel>], iteration_bounds = array<i64: 1>, scalar_prefetch = 0 : i64, scratch_operands = 0 : i64, tpu.core_type = #tpu.core_type<tc>, window_params = [{transform_indices = @transform_0, window_bounds = array<i64: 2, 16, 32>}, {pipeline_mode = #tpu.pipeline_mode<synchronous>, transform_indices = @transform_1, window_bounds = array<i64: 96, 128>}, {pipeline_mode = #tpu.pipeline_mode<synchronous>, transform_indices = @transform_2, window_bounds = array<i64: 1, 128>}, {transform_indices = @transform_3, window_bounds = array<i64: 2, 128>}]} {
    %c0 = arith.constant 0 : index
    %c0_0 = arith.constant 0 : index
    %c0_1 = arith.constant 0 : index
    %0 = vector.load %arg1[%c0, %c0_0, %c0_1] : memref<2x16x32xf32, #tpu.memory_space<vmem>>, vector<2x16x32xf32>
    %cst = arith.constant 0.000000e+00 : f32
    %1 = vector.broadcast %cst : f32 to vector<2x1x32xf32>
    %2 = vector.extract_strided_slice %0 {offsets = [0, 0, 0], sizes = [2, 15, 32], strides = [1, 1, 1]} : vector<2x16x32xf32> to vector<2x15x32xf32>
    %3 = tpu.concatenate %1, %2 in 1 : vector<2x1x32xf32>, vector<2x15x32xf32> -> vector<2x16x32xf32>
    %4 = vector.extract_strided_slice %0 {offsets = [0, 1, 0], sizes = [2, 15, 32], strides = [1, 1, 1]} : vector<2x16x32xf32> to vector<2x15x32xf32>
    %5 = tpu.concatenate %4, %1 in 1 : vector<2x15x32xf32>, vector<2x1x32xf32> -> vector<2x16x32xf32>
    %6 = tpu.concatenate %3, %0, %5 in 2 : vector<2x16x32xf32>, vector<2x16x32xf32>, vector<2x16x32xf32> -> vector<2x16x96xf32>
    %7 = vector.shape_cast %6 : vector<2x16x96xf32> to vector<32x96xf32>
    %c0_2 = arith.constant 0 : index
    %c0_3 = arith.constant 0 : index
    %8 = vector.load %arg2[%c0_2, %c0_3] : memref<96x128xf32, #tpu.memory_space<vmem>>, vector<96x128xf32>
    %cst_4 = arith.constant dense<0.000000e+00> : vector<32x128xf32>
    %9 = tpu.matmul %7, %8, %cst_4 {dimension_numbers = #tpu.dot_dimension_numbers<[1], [0], [0], [1], [0, 0, 1, 1], [], []>} : vector<32x96xf32>, vector<96x128xf32>, vector<32x128xf32> -> vector<32x128xf32>
    %10 = vector.shape_cast %9 : vector<32x128xf32> to vector<2x16x128xf32>
    %cst_5 = arith.constant dense<0xFF800000> : vector<2x128xf32>
    %11 = vector.multi_reduction <maximumf>, %10, %cst_5 [1] : vector<2x16x128xf32> to vector<2x128xf32>
    %c0_6 = arith.constant 0 : index
    %c0_7 = arith.constant 0 : index
    %12 = vector.load %arg3[%c0_6, %c0_7] : memref<1x128xf32, #tpu.memory_space<vmem>>, vector<1x128xf32>
    %13 = vector.broadcast %12 : vector<1x128xf32> to vector<2x128xf32>
    %14 = arith.addf %11, %13 : vector<2x128xf32>
    %15 = math.tanh %14 : vector<2x128xf32>
    %c0_8 = arith.constant 0 : index
    %c0_9 = arith.constant 0 : index
    %16 = vector.load %arg4[%c0_8, %c0_9] : memref<2x128xf32, #tpu.memory_space<vmem>>, vector<2x128xf32>
    tpu.vector_store %arg4[%c0_8, %c0_9], %15 {strides = array<i32>} : memref<2x128xf32, #tpu.memory_space<vmem>>, vector<2x128xf32>,
    return
  }
  func.func @transform_0(%arg0: i32) -> (i32, i32, i32) {
    %c0_i32 = arith.constant 0 : i32
    %c0_i32_0 = arith.constant 0 : i32
    %c0_i32_1 = arith.constant 0 : i32
    return %arg0, %c0_i32, %c0_i32_0 : i32, i32, i32
  }
  func.func @transform_1(%arg0: i32) -> (i32, i32) {
    %c0_i32 = arith.constant 0 : i32
    %c0_i32_0 = arith.constant 0 : i32
    %c0_i32_1 = arith.constant 0 : i32
    return %c0_i32, %c0_i32_0 : i32, i32
  }
  func.func @transform_2(%arg0: i32) -> (i32, i32) {
    %c0_i32 = arith.constant 0 : i32
    %c0_i32_0 = arith.constant 0 : i32
    %c0_i32_1 = arith.constant 0 : i32
    return %c0_i32, %c0_i32_0 : i32, i32
  }
  func.func @transform_3(%arg0: i32) -> (i32, i32) {
    %c0_i32 = arith.constant 0 : i32
    %c0_i32_0 = arith.constant 0 : i32
    return %arg0, %c0_i32 : i32, i32
  }
}

</mosaic_0001>

<bundles_post_ra>
// kernel: encoder_forward.1
= control target key start
LH: loop header
LB: loop body
LE: loop exit
PB: predicated region body
PF: predicated region fallthrough
CT: control target
= control target key end

     0   :  { %s357_s18 = smov 32   ;;  %vm36_vm0 = vcmask 1046528   ;;  %vm23_vm1 = vcmask 1040384   ;;  %s485_s0 = inlined_call_operand.vmem [shape: f32[2,16,32], index: 0, kind: input, shape index: {}]   ;;  %s486_s1 = inlined_call_operand.vmem [shape: f32[96,128], index: 1, kind: input, shape index: {}]   ;;  %s487_s2 = inlined_call_operand.vmem [shape: f32[1,128], index: 2, kind: input, shape index: {}]   ;;  %s488_s3 = inlined_call_operand.hbm [shape: f32[2,128], index: 3, kind: output, shape index: {}]  }
   0x1   :  { %v383_v0 = vld [vmem:[%s485_s0 + $0x10] sm:$0xff]  ;;  %v388_v1 = vld [vmem:[%s485_s0] sm:$0xff]  ;;  %v18_v2 = vld [vmem:[%s485_s0 + $0x18] sm:$0xff] }
   0x2   :  { %51 = vrot.lane.b32.xlu0 %v383_v0, %s357_s18  ;;  %v40_v3 = vrot.slane %v383_v0, 1  ;;  %47 = vrot.lane.b32.xlu1 %v388_v1, %s357_s18  ;;  %v83_v4 = vld [vmem:[%s486_s1] sm:$0xff]  ;;  %v28_v5 = vrot.slane %v18_v2, 7  ;;  %v41_v6 = vrot.slane %v18_v2, 1  ;;  %v16_v7 = vld [vmem:[%s485_s0 + $0x8] sm:$0xff]  ;;  %v27_v13 = vrot.slane %v383_v0, 7 }
   0x3   :  { %v84_v8 = vld [vmem:[%s486_s1 + $0x8] sm:$0xff]  ;;  %v85_v9 = vld [vmem:[%s486_s1 + $0x10] sm:$0xff]  ;;  %v25_v10 = vrot.slane %v16_v7, 7  ;;  %v86_v12 = vld [vmem:[%s486_s1 + $0x18] sm:$0xff]  ;;  %v24_v15 = vrot.slane %v388_v1, 7  ;;  %s358_s0 = smov 64  }
   0x4   :  { %v290_v11 = vpack.c.bf16 %v84_v8, %v83_v4  ;;  %v42_v14 = vsel %vm36_vm0, %v40_v3, %v41_v6  ;;  %v294_v16 = vpack.c.bf16 %v86_v12, %v85_v9  ;;  %v87_v17 = vld [vmem:[%s486_s1 + $0x20] sm:$0xff]  ;;  %v88_v18 = vld [vmem:[%s486_s1 + $0x28] sm:$0xff]  ;;  %v37_v19 = vrot.slane %v388_v1, 1 }
   0x5   :  { %v46_v20 = vsel %vm36_vm0, %v41_v6, 0.0  ;;  %v38_v21 = vrot.slane %v16_v7, 1  ;;  %v29_v22 = vsel %vm23_vm1, %v27_v13, %v28_v5 }
   0x6   :  { %53 = vrot.lane.b32.xlu0 %v18_v2, %s357_s18  ;;  %65 = vrot.lane.b32.xlu1 %v42_v14, %s358_s0 }
   0x7   :  { %314 = vmatprep.subr.bf16.mxu1 %v290_v11  ;;  %291 = vmatprep.subr.bf16.mxu0 %v290_v11 }
   0x8   :  { %8 = vsyncpa [#allocation3], 0  ;;  %320 = vmatpush3.bf16.msra.mxu1 %v290_v11  ;;  %293 = vmatpush3.bf16.msra.mxu0 %v290_v11  ;;  %v26_v23 = vsel %vm23_vm1, %v24_v15, %v25_v10  ;;  %v298_v24 = vpack.c.bf16 %v88_v18, %v87_v17  ;;  %v89_v25 = vld [vmem:[%s486_s1 + $0x30] sm:$0xff]  ;;  %v90_v26 = vld [vmem:[%s486_s1 + $0x38] sm:$0xff]  ;;  %v45_v27 = vsel %vm36_vm0, %v38_v21, 0.0  ;;  %v39_v28 = vsel %vm36_vm0, %v37_v19, %v38_v21  ;;  %s359_s19 = smov [#allocation2]  }
   0x9   :  { %315 = vmatprep.subr.bf16.mxu1 %v294_v16  ;;  %295 = vmatprep.subr.bf16.mxu0 %v294_v16  ;;  %v302_v29 = vpack.c.bf16 %v90_v26, %v89_v25  ;;  %v91_v30 = vld [vmem:[%s486_s1 + $0x40] sm:$0xff]  ;;  %v92_v31 = vld [vmem:[%s486_s1 + $0x48] sm:$0xff]  ;;  %v93_v33 = vld [vmem:[%s486_s1 + $0x50] sm:$0xff]  ;;  %vm73_vm2 = vcmask 261120   ;;  %v35_v38 = vsel %vm23_vm1, 0.0, %v27_v13  ;;  %vm78_vm3 = vcmask 523264  }
   0xa   :  { %67 = vrot.lane.b32.xlu0 %v46_v20, %s358_s0  ;;  %49 = vrot.lane.b32.xlu1 %v16_v7, %s357_s18  ;;  %v306_v32 = vpack.c.bf16 %v92_v31, %v91_v30  ;;  %v94_v34 = vld [vmem:[%s486_s1 + $0x58] sm:$0xff]  ;;  %vm95_vm4 = vcmask 785408   ;;  %v34_v46 = vsel %vm23_vm1, 0.0, %v24_v15  ;;  %v243_v3 = vld [vmem:[%s487_s2] ss:$0 sm:$0xff]  ;;  %s231_s20 = sshll.u32 %s359_s19, 4  ;;  %s232_s20 = int_to_ptr.vmem [resolvable:$true] %s231_s20 }
   0xb   :  { %v310_v35 = vpack.c.bf16 %v94_v34, %v93_v33  ;;  %vm221_vm5 = vcmask 1041409   ;;  %s333_s21 = scalar_lea.vmem %s232_s20, 32  ;;  %p338_p1 = scmp.lt.s32.totalorder %s232_s20, %s232_s20 }
   0xc   :  { %321 = vmatpush3.bf16.msra.mxu1 %v294_v16  ;;  %297 = vmatpush3.bf16.msra.mxu0 %v294_v16  ;;  %p334_p0 = scmp.ne.s32.totalorder %s232_s20, %s333_s21  ;;  %p339_p2 = scmp.lt.s32.totalorder %s333_s21, %s333_s21 }
   0xd   :  { %316 = vmatprep.subr.bf16.mxu1 %v298_v24  ;;  %299 = vmatprep.subr.bf16.mxu0 %v298_v24 }
   0xe   :  { %63 = vrot.lane.b32.xlu1 %v45_v27, %s358_s0  ;;  %61 = vrot.lane.b32.xlu0 %v39_v28, %s358_s0  ;;  %p340_p3 = por %p339_p2, %p338_p1 }
  0x10   :  { %322 = vmatpush3.bf16.msra.mxu1 %v298_v24  ;;  %301 = vmatpush3.bf16.msra.mxu0 %v298_v24  ;;  %p341_p4 = pnand %p340_p3, %p334_p0 }
  0x11   :  { %317 = vmatprep.subr.bf16.mxu1 %v302_v29  ;;  %303 = vmatprep.subr.bf16.mxu0 %v302_v29 }
  0x14   :  { %323 = vmatpush3.bf16.msra.mxu1 %v302_v29  ;;  %305 = vmatpush3.bf16.msra.mxu0 %v302_v29 }
  0x15   :  { %318 = vmatprep.subr.bf16.mxu1 %v306_v32  ;;  %307 = vmatprep.subr.bf16.mxu0 %v306_v32 }
  0x18   :  { %324 = vmatpush3.bf16.msra.mxu1 %v306_v32  ;;  %309 = vmatpush3.bf16.msra.mxu0 %v306_v32 }
  0x19   :  { %319 = vmatprep.subr.bf16.mxu1 %v310_v35  ;;  %311 = vmatprep.subr.bf16.mxu0 %v310_v35 }
  0x1c   :  { %325 = vmatpush3.bf16.msra.mxu1 %v310_v35  ;;  %313 = vmatpush3.bf16.msra.mxu0 %v310_v35 }
  0x74   :  { %v52_v36 = vpop.permute.xlu0 %51  ;;  %v48_v37 = vpop.permute.xlu1 %47 }
  0x75   :  { %v76_v39 = vsel %vm73_vm2, %v35_v38, %v52_v36  ;;  %v74_v48 = vsel %vm73_vm2, %v34_v46, %v48_v37 }
  0x78   :  { %v54_v40 = vpop.permute.xlu0 %53  ;;  %v66_v41 = vpop.permute.xlu1 %65 }
  0x79   :  { %v81_v42 = vsel %vm78_vm3, %v76_v39, %v66_v41  ;;  %v77_v43 = vsel %vm73_vm2, %v29_v22, %v54_v40 }
  0x7a   :  { %287 = vmatprep.mubr.msk.f32.mxu1 %vm95_vm4, %v81_v42 }
  0x7c   :  { %v68_v44 = vpop.permute.xlu0 %67  ;;  %v50_v45 = vpop.permute.xlu1 %49 }
  0x7d   :  { %v82_v47 = vsel %vm78_vm3, %v77_v43, %v68_v44  ;;  %v75_v49 = vsel %vm73_vm2, %v26_v23, %v50_v45 }
  0x7e   :  { %288 = vmatmul.mubr.msk.f32.vlgmr.msra.gmra.mrb[0].mxu1 %vm95_vm4, %v82_v47 }
  0x80   :  { %v64_v50 = vpop.permute.xlu1 %63  ;;  %v62_v51 = vpop.permute.xlu0 %61 }
  0x81   :  { %v80_v52 = vsel %vm78_vm3, %v75_v49, %v64_v50  ;;  %v79_v53 = vsel %vm78_vm3, %v74_v48, %v62_v51 }
  0x82   :  { %284 = vmatprep.mubr.msk.f32.mxu0 %vm95_vm4, %v79_v53 }
  0x83   :  { %285 = vmatmul.mubr.msk.f32.vlgmr.msra.gmra.mrb[0].mxu0 %vm95_vm4, %v80_v52 }
 0x151   :  { %v289_v54 = vpop.f32.mrb[0].mxu1 }
 0x152   :  { %v184_v55 = vpop.f32.mrb[1].mxu1 }
 0x153   :  { %v200_v56 = vmax.f32 %v184_v55, %v289_v54 }
 0x155   :  { %v201_v57 = vrot.slane %v200_v56, 4 }
 0x156   :  { %v286_v58 = vpop.f32.mrb[0].mxu0 }
 0x157   :  { %v202_v59 = vmax.f32 %v200_v56, %v201_v57  ;;  %v174_v60 = vpop.f32.mrb[1].mxu0 }
 0x158   :  { %v193_v61 = vmax.f32 %v174_v60, %v286_v58 }
 0x159   :  { %v203_v62 = vrot.slane %v202_v59, 2 }
 0x15a   :  { %v194_v63 = vrot.slane %v193_v61, 4 }
 0x15b   :  { %v204_v0 = vmax.f32 %v202_v59, %v203_v62 }
 0x15c   :  { %v195_v1 = vmax.f32 %v193_v61, %v194_v63 }
 0x15d   :  { %v205_v2 = vrot.slane %v204_v0, 1 }
 0x15e   :  { %v196_v4 = vrot.slane %v195_v1, 2 }
 0x15f   :  { %v206_v5 = vmax.f32 %v204_v0, %v205_v2 }
 0x160   :  { %v197_v6 = vmax.f32 %v195_v1, %v196_v4 }
 0x161   :  { %v215_v7 = vadd.f32 %v243_v3, %v206_v5 }
 0x162   :  { %v198_v8 = vrot.slane %v197_v6, 1 }
 0x163   :  { %329 = vtanh.f32 %v215_v7 }
 0x164   :  { %v199_v9 = vmax.f32 %v197_v6, %v198_v8 }
 0x166   :  { %v214_v10 = vadd.f32 %v243_v3, %v199_v9 }
 0x168   :  { %331 = vtanh.f32 %v214_v10 }
 0x16d   :  { %v330_v11 = vpop.eup %329 }
 0x16e   :  { %v220_v12 = vrot.slane %v330_v11, 7 }
 0x172   :  { %v332_v13 = vpop.eup %331 }
 0x173   :  { %v222_v14 = vsel %vm221_vm5, %v220_v12, %v332_v13 }
 0x174   :  { %224 = vst [vmem:[#allocation2] sm:$0x3] %v222_v14 }
 0x175   :  { %344 = shalt.err (!%p341_p4)
}
 0x176   :  { %s345_s23 = scalar_lea.hbm %s488_s3, 32 }
 0x177   :  { %p346_p5 = scmp.ne.s32.totalorder %s488_s3, %s345_s23  ;;  %p349_p6 = scmp.lt.u32.totalorder %s345_s23, %s488_s3 }
 0x179   :  { %p351_p7 = pnand %p349_p6, %p346_p5 }
 0x17b   :  { %354 = shalt.err (!%p351_p7)
}
 0x17c   :  { %234 = dma.vmem_to_hbm [thread:$0]  %s232_s20, 32, %s488_s3, [#allocation3]  }
 0x17d   :  { %355 = dma.done.wait [#allocation3], 32  }
 0x17e   :  { %356 = vsyncadd [#allocation3], 4294967264 }
 0x17f   :  { %238 = vsyncpa [#allocation3], 1 }

</bundles_post_ra>
